<compile_context>
chip_gen: v7x
topology: tpu7x:2x2x1
jax: 0.10.0
libtpu: 0.0.40
codegen_flags: <defaults>
</compile_context>

<pallas_src>
import functools

import jax
import jax.numpy as jnp
from jax.experimental import pallas as pl
from jax.experimental.pallas import tpu as pltpu


PARAM_NAMES = ("conv_w", "conv_b", "fc_w", "fc_b")


# ---------------------------------------------------------------------------
# Pallas kernels
# ---------------------------------------------------------------------------
def encoder_kernel(sel_ref, patches_ref, conv_w_ref, conv_b_ref, fc_w_ref, fc_b_ref,
                   out_ref, *, hw):
    """Fused conv(matmul) + bias + ReLU + global mean pool + linear for one view.

    sel_ref    : (V,) int32 SMEM  scalar-prefetch (only used by the index_maps)
    patches_ref: (B*HW, CKK) bf16 im2col patches for this view
    conv_w_ref : (CKK, hidden) bf16   (student or teacher, picked by index_map)
    conv_b_ref : (1, hidden)   f32
    fc_w_ref   : (hidden, proj) f32
    fc_b_ref   : (1, proj)      f32
    out_ref    : (B, proj)      f32   per-view output block (written whole)
    """
    del sel_ref  # consumed by the index_maps, not by the body
    tb = out_ref.shape[0]
    # One big MXU matmul for the conv, f32 accumulation.
    conv = jnp.dot(patches_ref[...], conv_w_ref[...],
                   preferred_element_type=jnp.float32) + conv_b_ref[...]   # (B*HW, hidden)
    act = jnp.maximum(conv, 0.0)                                           # ReLU, f32
    hidden = act.shape[-1]
    # Global average pool per image: sum over HW, scale folded onto the tiny pooled tile.
    pooled = jnp.sum(act.reshape(tb, hw, hidden), axis=1) * (1.0 / hw)     # (B, hidden)
    proj = jnp.dot(pooled, fc_w_ref[...],
                   preferred_element_type=jnp.float32) + fc_b_ref[...]     # (B, proj)
    out_ref[...] = proj.astype(out_ref.dtype)


def ema_kernel(teacher_ref, student_ref, out_ref, *, tau):
    """Elementwise EMA update on a lane/sublane-dense tile: out = tau*t + (1-tau)*s."""
    out_ref[...] = tau * teacher_ref[...] + (1.0 - tau) * student_ref[...]


# ---------------------------------------------------------------------------
# Glue: im2col + jitted wrappers
# ---------------------------------------------------------------------------
def im2col_3x3(x_nhwc):
    """x: (B, H, W, C) -> patches (B, H*W, 9*C), 'same' padding, patch order [ki, kj, c]."""
    B, H, W, C = x_nhwc.shape
    xp = jnp.pad(x_nhwc, ((0, 0), (1, 1), (1, 1), (0, 0)))
    cols = []
    for ki in range(3):
        for kj in range(3):
            cols.append(xp[:, ki:ki + H, kj:kj + W, :])
    patches = jnp.stack(cols, axis=3)            # (B, H, W, 9, C)
    return patches.reshape(B, H * W, 9 * C)


def _momentum_forward_impl(student_params, teacher_params, x_students, x_teacher):
    """Run all student views + teacher view with ONE pallas_call.

    Weights are stacked [student, teacher] along a leading axis; a scalar-prefetch
    selector array picks which weight set each grid step (view) uses.
    """
    xs = list(x_students) + [x_teacher]
    n_views = len(xs)
    B, C, H, W = xs[0].shape
    HW = H * W
    CKK = 9 * C
    hidden = student_params["conv_w"].shape[1]
    proj = student_params["fc_w"].shape[1]

    def to_patches(x_nchw):
        x = jnp.transpose(x_nchw, (0, 2, 3, 1)).astype(jnp.float32)   # NCHW -> NHWC
        return im2col_3x3(x).reshape(B * HW, CKK)

    # (V, B*HW, CKK) bf16 patches: halves DMA bytes, bf16 MXU; f32 accumulation in-kernel.
    patches = jnp.stack([to_patches(x) for x in xs], axis=0).astype(jnp.bfloat16)

    # Stacked weights: index 0 = student, index 1 = teacher.
    conv_w = jnp.stack([student_params["conv_w"], teacher_params["conv_w"]]).astype(jnp.bfloat16)
    conv_b = jnp.stack([student_params["conv_b"], teacher_params["conv_b"]])
    fc_w = jnp.stack([student_params["fc_w"], teacher_params["fc_w"]])
    fc_b = jnp.stack([student_params["fc_b"], teacher_params["fc_b"]])

    # Per-view model selector (student views -> 0, teacher -> 1), scalar-prefetched to SMEM.
    sel = jnp.array([0] * (n_views - 1) + [1], dtype=jnp.int32)

    out = pl.pallas_call(
        functools.partial(encoder_kernel, hw=HW),
        out_shape=jax.ShapeDtypeStruct((n_views, B, proj), jnp.float32),
        grid_spec=pltpu.PrefetchScalarGridSpec(
            num_scalar_prefetch=1,
            grid=(n_views,),
            in_specs=[
                # per-view patches block
                pl.BlockSpec((None, B * HW, CKK), lambda v, sel_ref: (v, 0, 0)),
                # weight blocks: student/teacher chosen by the prefetched selector
                pl.BlockSpec((None, CKK, hidden), lambda v, sel_ref: (sel_ref[v], 0, 0)),
                pl.BlockSpec((None, 1, hidden), lambda v, sel_ref: (sel_ref[v], 0, 0)),
                pl.BlockSpec((None, hidden, proj), lambda v, sel_ref: (sel_ref[v], 0, 0)),
                pl.BlockSpec((None, 1, proj), lambda v, sel_ref: (sel_ref[v], 0, 0)),
            ],
            out_specs=pl.BlockSpec((None, B, proj), lambda v, sel_ref: (v, 0, 0)),
        ),
        compiler_params=pltpu.CompilerParams(dimension_semantics=("arbitrary",)),
    )(sel, patches, conv_w, conv_b, fc_w, fc_b)

    out_sts = [out[i] for i in range(n_views - 1)]
    out_tch = out[n_views - 1]
    return out_sts, out_tch


momentum_forward = jax.jit(_momentum_forward_impl)


@functools.partial(jax.jit, static_argnums=(2,))
def ema_update_params(teacher_params, student_params, tau):
    """One fused, in-place (aliased) EMA update over ALL parameters.

    All params are flattened, concatenated, padded to a (rows, 128) tile with rows a
    multiple of 8 (sublane/lane dense -> unmasked vld/vst), updated with a single
    pallas_call, then split back to their original shapes.
    """
    shapes = [teacher_params[n].shape for n in PARAM_NAMES]
    sizes = [int(teacher_params[n].size) for n in PARAM_NAMES]
    flat_t = jnp.concatenate([teacher_params[n].reshape(-1) for n in PARAM_NAMES])
    flat_s = jnp.concatenate([student_params[n].reshape(-1) for n in PARAM_NAMES])
    n = flat_t.shape[0]

    lanes = 128
    rows = pl.cdiv(n, lanes)
    rows = pl.cdiv(rows, 8) * 8            # sublane-dense
    n_pad = rows * lanes
    t2 = jnp.pad(flat_t, (0, n_pad - n)).reshape(rows, lanes)
    s2 = jnp.pad(flat_s, (0, n_pad - n)).reshape(rows, lanes)

    out2 = pl.pallas_call(
        functools.partial(ema_kernel, tau=tau),
        out_shape=jax.ShapeDtypeStruct((rows, lanes), flat_t.dtype),
        in_specs=[pl.BlockSpec((rows, lanes), lambda: (0, 0)),
                  pl.BlockSpec((rows, lanes), lambda: (0, 0))],
        out_specs=pl.BlockSpec((rows, lanes), lambda: (0, 0)),
        input_output_aliases={0: 0},       # update the teacher buffer in place
    )(t2, s2)

    out_flat = out2.reshape(-1)
    new_params, off = {}, 0
    for name, shp, sz in zip(PARAM_NAMES, shapes, sizes):
        new_params[name] = out_flat[off:off + sz].reshape(shp)
        off += sz
    return new_params


# ---------------------------------------------------------------------------
# Parameter init (deterministic, synthetic)
# ---------------------------------------------------------------------------
def init_encoder_params(key, c_in, hidden, proj):
    k1, k2, k3, k4 = jax.random.split(key, 4)
    ckk = 9 * c_in
    conv_w = jax.random.normal(k1, (ckk, hidden), jnp.float32) / jnp.sqrt(ckk)
    conv_b = jax.random.normal(k2, (1, hidden), jnp.float32) * 0.01
    fc_w = jax.random.normal(k3, (hidden, proj), jnp.float32) / jnp.sqrt(hidden)
    fc_b = jax.random.normal(k4, (1, proj), jnp.float32) * 0.01
    return {"conv_w": conv_w, "conv_b": conv_b, "fc_w": fc_w, "fc_b": fc_b}


class MomentumModelPallas:
    """JAX/Pallas equivalent of the PyTorch MomentumModel wrapper."""

    def __init__(self, tau, key, c_in, hidden, proj):
        self.tau = tau
        ks, kt = jax.random.split(key)
        self.student_params = init_encoder_params(ks, c_in, hidden, proj)
        self.teacher_params = init_encoder_params(kt, c_in, hidden, proj)

    def copy_state_dict(self):
        self.teacher_params = {k: v for k, v in self.student_params.items()}

    def forward(self, x_students, x_teacher):
        # All student views + the teacher view run in ONE pallas_call (per-view weight
        # selection via scalar prefetch). Requires all views to share (B, C, H, W).
        return momentum_forward(self.student_params, self.teacher_params,
                                tuple(x_students), x_teacher)

    def update_teacher(self):
        self.teacher_params = ema_update_params(
            self.teacher_params, self.student_params, self.tau)


# ---------------------------------------------------------------------------
# Pure-JAX reference (mirrors the kernel's bf16 matmul inputs, f32 accumulation)
# ---------------------------------------------------------------------------
def encoder_reference(x_nchw, params):
    x = jnp.transpose(x_nchw, (0, 2, 3, 1)).astype(jnp.float32)
    patches = im2col_3x3(x).astype(jnp.bfloat16)
    conv_w = params["conv_w"].astype(jnp.bfloat16)
    conv = jnp.einsum("bpk,kh->bph", patches, conv_w,
                      preferred_element_type=jnp.float32) + params["conv_b"][None]
    act = jnp.maximum(conv, 0.0)
    pooled = jnp.mean(act, axis=1)
    return pooled @ params["fc_w"] + params["fc_b"]


# ---------------------------------------------------------------------------
if __name__ == "__main__":
    key = jax.random.PRNGKey(0)
    k_model, k_s1, k_s2, k_t = jax.random.split(key, 4)

    B, C, H, W = 2, 4, 16, 16
    HIDDEN, PROJ = 32, 16
    TAU = 0.99

    model = MomentumModelPallas(TAU, k_model, c_in=C, hidden=HIDDEN, proj=PROJ)
    model.copy_state_dict()  # teacher <- student (as the PyTorch module does before training)

    # Two student "views" + one teacher view (NCHW, PyTorch convention).
    x_students = [
        jax.random.normal(k_s1, (B, C, H, W), jnp.float32),
        jax.random.normal(k_s2, (B, C, H, W), jnp.float32),
    ]
    x_teacher = jax.random.normal(k_t, (B, C, H, W), jnp.float32)

    out_sts, out_tch = model.forward(x_students, x_teacher)
    jax.block_until_ready(out_tch)
    for o in out_sts:
        jax.block_until_ready(o)

    # Correctness vs. pure-JAX reference (same bf16 matmul inputs -> tight tolerance).
    for x_st, o_st in zip(x_students, out_sts):
        ref = encoder_reference(x_st, model.student_params)
        assert jnp.allclose(o_st, ref, atol=1e-3, rtol=1e-3), "student output mismatch"
    ref_t = encoder_reference(x_teacher, model.teacher_params)
    assert jnp.allclose(out_tch, ref_t, atol=1e-3, rtol=1e-3), "teacher output mismatch"

    # Exercise + check the fused momentum (EMA) update kernel.
    old_teacher = model.teacher_params
    model.update_teacher()
    jax.block_until_ready(model.teacher_params["conv_w"])
    for name in PARAM_NAMES:
        expect = TAU * old_teacher[name] + (1.0 - TAU) * model.student_params[name]
        assert jnp.allclose(model.teacher_params[name], expect,
                            atol=1e-6, rtol=1e-6), f"EMA mismatch for {name}"

    print("KERNEL_OK")
</pallas_src>

<mosaic_0001>
module attributes {stable_mosaic.version = 11 : i64} {
  func.func @encoder_kernel(%arg0: i32, %arg1: memref<3xi32, #tpu.memory_space<smem>>, %arg2: memref<1x512x36xbf16, #tpu.memory_space<vmem>>, %arg3: memref<1x36x32xbf16, #tpu.memory_space<vmem>>, %arg4: memref<1x1x32xf32, #tpu.memory_space<vmem>>, %arg5: memref<1x32x16xf32, #tpu.memory_space<vmem>>, %arg6: memref<1x1x16xf32, #tpu.memory_space<vmem>>, %arg7: memref<1x2x16xf32, #tpu.memory_space<vmem>>) attributes {dimension_semantics = [#tpu.dimension_semantics<arbitrary>], iteration_bounds = array<i64: 3>, scalar_prefetch = 1 : i64, scratch_operands = 0 : i64, tpu.core_type = #tpu.core_type<tc>, window_params = [{transform_indices = @transform_0, window_bounds = array<i64: 1, 512, 36>}, {transform_indices = @transform_1, window_bounds = array<i64: 1, 36, 32>}, {transform_indices = @transform_2, window_bounds = array<i64: 1, 1, 32>}, {transform_indices = @transform_3, window_bounds = array<i64: 1, 32, 16>}, {transform_indices = @transform_4, window_bounds = array<i64: 1, 1, 16>}, {transform_indices = @transform_5, window_bounds = array<i64: 1, 2, 16>}]} {
    %c0 = arith.constant 0 : index
    %c0_0 = arith.constant 0 : index
    %c0_1 = arith.constant 0 : index
    %0 = vector.load %arg2[%c0, %c0_0, %c0_1] : memref<1x512x36xbf16, #tpu.memory_space<vmem>>, vector<1x512x36xbf16>
    %1 = vector.shape_cast %0 : vector<1x512x36xbf16> to vector<512x36xbf16>
    %c0_2 = arith.constant 0 : index
    %c0_3 = arith.constant 0 : index
    %c0_4 = arith.constant 0 : index
    %2 = vector.load %arg3[%c0_2, %c0_3, %c0_4] : memref<1x36x32xbf16, #tpu.memory_space<vmem>>, vector<1x36x32xbf16>
    %3 = vector.shape_cast %2 : vector<1x36x32xbf16> to vector<36x32xbf16>
    %cst = arith.constant dense<0.000000e+00> : vector<512x32xf32>
    %4 = tpu.matmul %1, %3, %cst {dimension_numbers = #tpu.dot_dimension_numbers<[1], [0], [0], [1], [0, 0, 1, 1], [], []>} : vector<512x36xbf16>, vector<36x32xbf16>, vector<512x32xf32> -> vector<512x32xf32>
    %c0_5 = arith.constant 0 : index
    %c0_6 = arith.constant 0 : index
    %c0_7 = arith.constant 0 : index
    %5 = vector.load %arg4[%c0_5, %c0_6, %c0_7] : memref<1x1x32xf32, #tpu.memory_space<vmem>>, vector<1x1x32xf32>
    %6 = vector.shape_cast %5 : vector<1x1x32xf32> to vector<1x32xf32>
    %7 = vector.broadcast %6 : vector<1x32xf32> to vector<512x32xf32>
    %8 = arith.addf %4, %7 : vector<512x32xf32>
    %cst_8 = arith.constant 0.000000e+00 : f32
    %9 = vector.broadcast %cst_8 : f32 to vector<512x32xf32>
    %10 = arith.maximumf %8, %9 : vector<512x32xf32>
    %11 = vector.shape_cast %10 : vector<512x32xf32> to vector<2x256x32xf32>
    %cst_9 = arith.constant dense<0.000000e+00> : vector<2x32xf32>
    %12 = vector.multi_reduction <add>, %11, %cst_9 [1] : vector<2x256x32xf32> to vector<2x32xf32>
    %cst_10 = arith.constant 3.906250e-03 : f32
    %13 = vector.broadcast %cst_10 : f32 to vector<2x32xf32>
    %14 = arith.mulf %12, %13 : vector<2x32xf32>
    %c0_11 = arith.constant 0 : index
    %c0_12 = arith.constant 0 : index
    %c0_13 = arith.constant 0 : index
    %15 = vector.load %arg5[%c0_11, %c0_12, %c0_13] : memref<1x32x16xf32, #tpu.memory_space<vmem>>, vector<1x32x16xf32>
    %16 = vector.shape_cast %15 : vector<1x32x16xf32> to vector<32x16xf32>
    %cst_14 = arith.constant dense<0.000000e+00> : vector<2x16xf32>
    %17 = tpu.matmul %14, %16, %cst_14 {dimension_numbers = #tpu.dot_dimension_numbers<[1], [0], [0], [1], [0, 0, 1, 1], [], []>} : vector<2x32xf32>, vector<32x16xf32>, vector<2x16xf32> -> vector<2x16xf32>
    %c0_15 = arith.constant 0 : index
    %c0_16 = arith.constant 0 : index
    %c0_17 = arith.constant 0 : index
    %18 = vector.load %arg6[%c0_15, %c0_16, %c0_17] : memref<1x1x16xf32, #tpu.memory_space<vmem>>, vector<1x1x16xf32>
    %19 = vector.shape_cast %18 : vector<1x1x16xf32> to vector<1x16xf32>
    %20 = vector.broadcast %19 : vector<1x16xf32> to vector<2x16xf32>
    %21 = arith.addf %17, %20 : vector<2x16xf32>
    %c0_18 = arith.constant 0 : index
    %c0_19 = arith.constant 0 : index
    %c0_20 = arith.constant 0 : index
    %22 = vector.load %arg7[%c0_18, %c0_19, %c0_20] : memref<1x2x16xf32, #tpu.memory_space<vmem>>, vector<1x2x16xf32>
    %23 = vector.shape_cast %22 : vector<1x2x16xf32> to vector<2x16xf32>
    %24 = vector.shape_cast %21 : vector<2x16xf32> to vector<1x2x16xf32>
    tpu.vector_store %arg7[%c0_18, %c0_19, %c0_20], %24 {strides = array<i32>} : memref<1x2x16xf32, #tpu.memory_space<vmem>>, vector<1x2x16xf32>,
    return
  }
  func.func @transform_0(%arg0: i32, %arg1: memref<3xi32, #tpu.memory_space<smem>>) -> (i32, i32, i32) {
    %c0_i32 = arith.constant 0 : i32
    %c0_i32_0 = arith.constant 0 : i32
    %c0_i32_1 = arith.constant 0 : i32
    return %arg0, %c0_i32, %c0_i32_0 : i32, i32, i32
  }
  func.func @transform_1(%arg0: i32, %arg1: memref<3xi32, #tpu.memory_space<smem>>) -> (i32, i32, i32) {
    %0 = arith.index_cast %arg0 : i32 to index
    %1 = memref.load %arg1[%0] : memref<3xi32, #tpu.memory_space<smem>>
    %c0_i32 = arith.constant 0 : i32
    %c0_i32_0 = arith.constant 0 : i32
    %c0_i32_1 = arith.constant 0 : i32
    return %1, %c0_i32, %c0_i32_0 : i32, i32, i32
  }
  func.func @transform_2(%arg0: i32, %arg1: memref<3xi32, #tpu.memory_space<smem>>) -> (i32, i32, i32) {
    %0 = arith.index_cast %arg0 : i32 to index
    %1 = memref.load %arg1[%0] : memref<3xi32, #tpu.memory_space<smem>>
    %c0_i32 = arith.constant 0 : i32
    %c0_i32_0 = arith.constant 0 : i32
    %c0_i32_1 = arith.constant 0 : i32
    return %1, %c0_i32, %c0_i32_0 : i32, i32, i32
  }
  func.func @transform_3(%arg0: i32, %arg1: memref<3xi32, #tpu.memory_space<smem>>) -> (i32, i32, i32) {
    %0 = arith.index_cast %arg0 : i32 to index
    %1 = memref.load %arg1[%0] : memref<3xi32, #tpu.memory_space<smem>>
    %c0_i32 = arith.constant 0 : i32
    %c0_i32_0 = arith.constant 0 : i32
    %c0_i32_1 = arith.constant 0 : i32
    return %1, %c0_i32, %c0_i32_0 : i32, i32, i32
  }
  func.func @transform_4(%arg0: i32, %arg1: memref<3xi32, #tpu.memory_space<smem>>) -> (i32, i32, i32) {
    %0 = arith.index_cast %arg0 : i32 to index
    %1 = memref.load %arg1[%0] : memref<3xi32, #tpu.memory_space<smem>>
    %c0_i32 = arith.constant 0 : i32
    %c0_i32_0 = arith.constant 0 : i32
    %c0_i32_1 = arith.constant 0 : i32
    return %1, %c0_i32, %c0_i32_0 : i32, i32, i32
  }
  func.func @transform_5(%arg0: i32, %arg1: memref<3xi32, #tpu.memory_space<smem>>) -> (i32, i32, i32) {
    %c0_i32 = arith.constant 0 : i32
    %c0_i32_0 = arith.constant 0 : i32
    %c0_i32_1 = arith.constant 0 : i32
    return %arg0, %c0_i32, %c0_i32_0 : i32, i32, i32
  }
}

</mosaic_0001>

<bundles_post_ra>
// kernel: _momentum_forward_impl.1
= control target key start
LH: loop header
LB: loop body
LE: loop exit
PB: predicated region body
PF: predicated region fallthrough
CT: control target
= control target key end

     0   :  { %s2021_s0 = inlined_call_operand.vmem [shape: s32[3], index: 0, kind: input, shape index: {}]   ;;  %s2022_s1 = inlined_call_operand.vmem [shape: bf16[3,512,36], index: 1, kind: input, shape index: {}]   ;;  %s2023_s2 = inlined_call_operand.vmem [shape: bf16[2,36,32], index: 2, kind: input, shape index: {}]   ;;  %s2024_s3 = inlined_call_operand.vmem [shape: f32[2,1,32], index: 3, kind: input, shape index: {}]   ;;  %s2025_s4 = inlined_call_operand.vmem [shape: f32[2,32,16], index: 4, kind: input, shape index: {}]   ;;  %s2026_s5 = inlined_call_operand.vmem [shape: f32[2,1,16], index: 5, kind: input, shape index: {}]   ;;  %s2027_s6 = inlined_call_operand.vmem [shape: f32[3,2,16], index: 6, kind: output, shape index: {}]  }
   0x1   :  { %s11_s23 = sshll.u32 %s2021_s0, 4  ;;  %s12_s23 = int_to_ptr.vmem [resolvable:$true] %s11_s23 }
   0x2   :  { %s1625_s24 = scalar_lea.vmem %s12_s23, 16  ;;  %p1630_p1 = scmp.lt.s32.totalorder %s12_s23, %s12_s23 }
   0x3   :  { %p1626_p0 = scmp.ne.s32.totalorder %s12_s23, %s1625_s24  ;;  %p1631_p2 = scmp.lt.s32.totalorder %s1625_s24, %s1625_s24 }
   0x5   :  { %p1632_p3 = por %p1631_p2, %p1630_p1 }
   0x7   :  { %p1633_p4 = pnand %p1632_p3, %p1626_p0 }
   0x9   :  { %1636 = shalt.err (!%p1633_p4)  }
   0xa   :  { %s1647_s25 = smov [#allocation3]  }
   0xb   :  { %14 = dma.vmem_to_smem %s12_s23, 16, %s1647_s25, [#allocation2] }
   0xc   :  { %1641 = dma.done.wait [#allocation2], 16 }
   0xd   :  { %1642 = vsyncadd [#allocation2], 4294967280 }
   0xe   :  { %16 = sfence }
   0xf   :  { %s1689_s26 = smov 0  }
  0x10 LB: > { %s1695_s0 = sadd.s32 4294967295, %s1645_s26   ;;  %p1361_p5 = scmp.ge.s32.totalorder %s1645_s26, 1  ;;  %s1645_s26 = sphi %s1689_s26, %s22_s26  }
  0x11   : > { %p246_p6 = scmp.lt.s32.totalorder %s1645_s26, 4 }
  0x13   : > { %p247_p7 = pnand %p1361_p5, %p246_p6 }
  0x14   : > { %s298_s27 = sld [smem:[#allocation3 + %s1695_s0]] (!%p247_p7)  ;;  %p293_p8 = scmp.lt.s32.totalorder (!%p247_p7), %s1695_s0, 2  ;;  %vm578_vm0 = vcmask (!%p247_p7), 293888   ;;  %vm675_vm1 = vcmask (!%p247_p7), 1041408   ;;  %v1648_v36 = vmov (!%p247_p7), 0.0|0.0   ;;  %vm1032_vm2 = vcmask (!%p247_p7), 261120  }
  0x15   : > { %250 = sbr.rel (%p247_p7) target bundleno = 622 (0x26e), region = 40  ;;  %s310_s13 = sld [smem:[#allocation3 + %s1695_s0]] (!%p247_p7)  ;;  %vm1649_vm3 = vmmov (!%p247_p7), 0   ;;  %vm1186_vm4 = vcmask (!%p247_p7), 1041409   ;;  %vm1260_vm5 = vcmask (!%p247_p7), 123904  }
  0x16   : > { %s305_s14 = sld [smem:[#allocation3 + %s1695_s0]] (!%p247_p7) }
  0x17   : > { %s317_s22 = sld [smem:[#allocation3 + %s1695_s0]] (!%p247_p7) }
  0x1a   : > { %p299_p9 = scmp.lt.s32.totalorder (!%p247_p7), %s298_s27, 1 }
  0x1b   : > { %p311_p10 = scmp.lt.s32.totalorder (!%p247_p7), %s310_s13, 1 }
  0x1c   : > { %s1702_s28 = scalar_select %p293_p8, %s1695_s0, 2 }
  0x1d   : > { %s2029_s27 = smov (!%p299_p9, %s298_s27), 1  ;;  %s2031_s13 = smov (!%p311_p10, %s310_s13), 1 }
  0x1e   : > { %s1440_s29 = sshll.u32 %s1702_s28, 8  ;;  %s1577_s9 = smul.u32 20, %s2029_s27 }
  0x1f   : > { %s1708_s8 = scalar_lea.vmem %s2022_s1, %s1440_s29  ;;  %s1441_s15 = sshll.u32 %s2031_s13, 5 }
  0x20   : > { %v1593_v0 = vld [vmem:[%s1708_s8] sm:$0xff]   ;;  %s303_s12 = scalar_lea.vmem %s2023_s2, %s1577_s9  ;;  %v1594_v5 = vld [vmem:[%s1708_s8 + $0x8] sm:$0xff]   ;;  %v1595_v6 = vld [vmem:[%s1708_s8 + $0x10] sm:$0xff]   ;;  %s1782_s18 = scalar_lea.vmem %s2025_s4, %s1441_s15 }
  0x21   : > { %1488 = vmatprep.mubr.msk.bf16.mxu0 %vm578_vm0, %v1593_v0  ;;  %v1590_v1 = vld [vmem:[%s303_s12] sm:$0xff]   ;;  %v1591_v2 = vld [vmem:[%s303_s12 + $0x8] sm:$0xff]   ;;  %v1592_v3 = vld [vmem:[%s303_s12 + $0x10] ss:$0 sps:$4 sm:$0x33]   ;;  %p306_p11 = scmp.lt.s32.totalorder %s305_s14, 1 }
  0x22   : > { %1482 = vmatprep.subr.bf16.mxu0 %v1590_v1  ;;  %1569 = vmatprep.subr.bf16.mxu1 %v1590_v1  ;;  %v677_v4 = vsel %vm675_vm1, %v1592_v3, 0  ;;  %v1611_v7 = vld [vmem:[%s1708_s8 + $0x90] sm:$0xff]   ;;  %v1612_v8 = vld [vmem:[%s1708_s8 + $0x98] sm:$0xff]   ;;  %v1613_v9 = vld [vmem:[%s1708_s8 + $0xa0] sm:$0xff]   ;;  %p318_p12 = scmp.lt.s32.totalorder %s317_s22, 1  ;;  %s1367_s27 = sshll.u32 %s1702_s28, 1 }
  0x23   : > { %1483 = vmatpush3.bf16.msra.mxu0 %v1590_v1  ;;  %1572 = vmatpush3.bf16.msra.mxu1 %v1590_v1  ;;  %v1596_v10 = vld [vmem:[%s1708_s8 + $0x18] sm:$0xff]   ;;  %v1597_v11 = vld [vmem:[%s1708_s8 + $0x20] sm:$0xff]   ;;  %v1614_v12 = vld [vmem:[%s1708_s8 + $0xa8] sm:$0xff]   ;;  %s2033_s14 = smov (!%p306_p11, %s305_s14), 1  ;;  %s325_s7 = scalar_lea.vmem %s2027_s6, %s1367_s27 }
  0x24   : > { %1484 = vmatprep.subr.bf16.mxu0 %v1591_v2  ;;  %1570 = vmatprep.subr.bf16.mxu1 %v1591_v2  ;;  %v1615_v13 = vld [vmem:[%s1708_s8 + $0xb0] sm:$0xff]   ;;  %v1598_v14 = vld [vmem:[%s1708_s8 + $0x28] sm:$0xff]   ;;  %v1616_v16 = vld [vmem:[%s1708_s8 + $0xb8] sm:$0xff]   ;;  %s308_s21 = scalar_lea.vmem %s2024_s3, %s2033_s14  ;;  %s2035_s22 = smov (!%p318_p12, %s317_s22), 1 }
  0x25   : > { %1524 = vmatprep.mubr.msk.bf16.mxu1 %vm578_vm0, %v1611_v7  ;;  %v1599_v15 = vld [vmem:[%s1708_s8 + $0x30] sm:$0xff]   ;;  %v1617_v17 = vld [vmem:[%s1708_s8 + $0xc0] sm:$0xff]   ;;  %v1600_v18 = vld [vmem:[%s1708_s8 + $0x38] sm:$0xff]   ;;  %s320_s25 = scalar_lea.vmem %s2026_s5, %s2035_s22 }
  0x26   : > { %v1601_v19 = vld [vmem:[%s1708_s8 + $0x40] sm:$0xff]   ;;  %v1618_v20 = vld [vmem:[%s1708_s8 + $0xc8] sm:$0xff]   ;;  %v1619_v21 = vld [vmem:[%s1708_s8 + $0xd0] sm:$0xff]  }
  0x27   : > { %1485 = vmatpush3.bf16.msra.mxu0 %v1591_v2  ;;  %1573 = vmatpush3.bf16.msra.mxu1 %v1591_v2  ;;  %v1602_v22 = vld [vmem:[%s1708_s8 + $0x48] sm:$0xff]   ;;  %v1603_v23 = vld [vmem:[%s1708_s8 + $0x50] sm:$0xff]   ;;  %v1620_v24 = vld [vmem:[%s1708_s8 + $0xd8] sm:$0xff]  }
  0x28   : > { %1575 = vmatprep.subr.msk.bf16.mxu0 %vm675_vm1, %v1592_v3  ;;  %1576 = vmatprep.subr.msk.bf16.mxu1 %vm675_vm1, %v1592_v3  ;;  %v1621_v25 = vld [vmem:[%s1708_s8 + $0xe0] sm:$0xff]   ;;  %v1604_v26 = vld [vmem:[%s1708_s8 + $0x58] sm:$0xff]   ;;  %v1622_v28 = vld [vmem:[%s1708_s8 + $0xe8] sm:$0xff]  }
  0x29   : > { %v1605_v27 = vld [vmem:[%s1708_s8 + $0x60] sm:$0xff]   ;;  %v1623_v29 = vld [vmem:[%s1708_s8 + $0xf0] sm:$0xff]   ;;  %v1606_v30 = vld [vmem:[%s1708_s8 + $0x68] sm:$0xff]  }
  0x2a   : > { %v1607_v31 = vld [vmem:[%s1708_s8 + $0x70] sm:$0xff]   ;;  %v1624_v32 = vld [vmem:[%s1708_s8 + $0xf8] sm:$0xff]   ;;  %v1609_v34 = vld [vmem:[%s1708_s8 + $0x80] sm:$0xff]  }
  0x2b   : > { %1487 = vmatpush3.bf16.msra.mxu0 %v677_v4  ;;  %1574 = vmatpush3.bf16.msra.mxu1 %v677_v4  ;;  %v1608_v33 = vld [vmem:[%s1708_s8 + $0x78] sm:$0xff]   ;;  %v1610_v35 = vld [vmem:[%s1708_s8 + $0x88] sm:$0xff]   ;;  %v1173_v37 = vld [vmem:[%s1782_s18] sm:$0xff] }
  0x2c   : > { %1563 = vmatprep.subr.bf16.mxu1 %v1648_v36  ;;  %v1174_v38 = vld [vmem:[%s1782_s18 + $0x8] sm:$0xff]  ;;  %v1789_v40 = vld [vmem:[%s308_s21] ss:$0 sm:$0xff] }
  0x2d   : > { %v1564_v39 = vpack.c.bf16 %v1174_v38, %v1173_v37 }
  0x2e   : > { %1489 = vmatmul.mubr.msk.bf16.vlgmr.msra.gmra.mrb[0].mxu0 %vm578_vm0, %v1594_v5  ;;  %1525 = vmatmul.mubr.msk.bf16.vlgmr.msra.gmra.mrb[0].mxu1 %vm578_vm0, %v1612_v8 }
  0x2f   : > { %1492 = vmatprep.mubr.msk.bf16.mxu0 %vm578_vm0, %v1595_v6  ;;  %1528 = vmatprep.mubr.msk.bf16.mxu1 %vm578_vm0, %v1613_v9 }
  0x30   : > { %1565 = vmatpush3.bf16.msra.mxu1 %v1564_v39 }
  0x31   : > { %1566 = vmatprep.subr.bf16.mxu1 %v1648_v36 }
  0x36   : > { %1493 = vmatmul.mubr.msk.bf16.gmra.mrb[4].mxu0 %vm578_vm0, %v1596_v10  ;;  %1529 = vmatmul.mubr.msk.bf16.gmra.mrb[4].mxu1 %vm578_vm0, %v1614_v12 }
  0x37   : > { %1496 = vmatprep.mubr.msk.bf16.mxu0 %vm578_vm0, %v1597_v11  ;;  %1532 = vmatprep.mubr.msk.bf16.mxu1 %vm578_vm0, %v1615_v13 }
  0x3e   : > { %1497 = vmatmul.mubr.msk.bf16.gmra.mrb[8].mxu0 %vm578_vm0, %v1598_v14  ;;  %1533 = vmatmul.mubr.msk.bf16.gmra.mrb[8].mxu1 %vm578_vm0, %v1616_v16 }
  0x3f   : > { %1500 = vmatprep.mubr.msk.bf16.mxu0 %vm578_vm0, %v1599_v15  ;;  %1536 = vmatprep.mubr.msk.bf16.mxu1 %vm578_vm0, %v1617_v17  ;;  %v1175_v17 = vld [vmem:[%s1782_s18 + $0x10] sm:$0xff] }
  0x46   : > { %1501 = vmatmul.mubr.msk.bf16.gmra.mrb[12].mxu0 %vm578_vm0, %v1600_v18  ;;  %1537 = vmatmul.mubr.msk.bf16.gmra.mrb[12].mxu1 %vm578_vm0, %v1618_v20  ;;  %v1176_v18 = vld [vmem:[%s1782_s18 + $0x18] sm:$0xff] }
  0x47   : > { %1504 = vmatprep.mubr.msk.bf16.mxu0 %vm578_vm0, %v1601_v19  ;;  %1540 = vmatprep.mubr.msk.bf16.mxu1 %vm578_vm0, %v1619_v21 }
  0x4e   : > { %1505 = vmatmul.mubr.msk.bf16.gmra.mrb[16].mxu0 %vm578_vm0, %v1602_v22  ;;  %1541 = vmatmul.mubr.msk.bf16.gmra.mrb[16].mxu1 %vm578_vm0, %v1620_v24  ;;  %v1567_v22 = vpack.c.bf16 %v1176_v18, %v1175_v17 }
  0x4f   : > { %1508 = vmatprep.mubr.msk.bf16.mxu0 %vm578_vm0, %v1603_v23  ;;  %1544 = vmatprep.mubr.msk.bf16.mxu1 %vm578_vm0, %v1621_v25 }
  0x50   : > { %1568 = vmatpush3.bf16.msra.mxu1 %v1567_v22 }
  0x56   : > { %1509 = vmatmul.mubr.msk.bf16.gmra.mrb[20].mxu0 %vm578_vm0, %v1604_v26  ;;  %1545 = vmatmul.mubr.msk.bf16.gmra.mrb[20].mxu1 %vm578_vm0, %v1622_v28 }
  0x57   : > { %1512 = vmatprep.mubr.msk.bf16.mxu0 %vm578_vm0, %v1605_v27  ;;  %1548 = vmatprep.mubr.msk.bf16.mxu1 %vm578_vm0, %v1623_v29 }
  0x5e   : > { %1513 = vmatmul.mubr.msk.bf16.gmra.mrb[24].mxu0 %vm578_vm0, %v1606_v30  ;;  %1549 = vmatmul.mubr.msk.bf16.gmra.mrb[24].mxu1 %vm578_vm0, %v1624_v32  ;;  %v1650_v32 = vmov 0.0  }
  0x5f   : > { %1516 = vmatprep.mubr.msk.bf16.mxu0 %vm578_vm0, %v1607_v31  ;;  %1560 = vmatprep.mubr.msk.f32.mxu1 %vm1649_vm3, %v1650_v32 }
  0x66   : > { %1517 = vmatmul.mubr.msk.bf16.gmra.mrb[28].mxu0 %vm578_vm0, %v1608_v33 }
  0x67   : > { %1520 = vmatprep.mubr.msk.bf16.mxu0 %vm578_vm0, %v1609_v34 }
  0x6e   : > { %1521 = vmatmul.mubr.msk.bf16.gmra.mrb[32].mxu0 %vm578_vm0, %v1610_v35 }
 0x101   : > { %v1490_v41 = vpop.f32.mrb[0].mxu0  ;;  %v1793_v47 = vpop.f32.mrb[0].mxu1 }
 0x102   : > { %v713_v42 = vpop.f32.mrb[1].mxu0  ;;  %v722_v43 = vadd.f32 %v1490_v41, %v1789_v40  ;;  %v1797_v51 = vpop.f32.mrb[1].mxu1 }
 0x103   : > { %v714_v44 = vadd.f32 %v1789_v40, %v713_v42  ;;  %v1491_v45 = vpop.f32.mrb[2].mxu0  ;;  %v1799_v52 = vpop.f32.mrb[2].mxu1 }
 0x104   : > { %v716_v46 = vpop.f32.mrb[3].mxu0  ;;  %v725_v49 = vadd.f32 %v1491_v45, %v1789_v40  ;;  %v970_v53 = vmax.f32 %v722_v43, 0.0  ;;  %v1801_v55 = vpop.f32.mrb[3].mxu1 }
 0x105   : > { %v968_v48 = vmax.f32 %v714_v44, 0.0  ;;  %v717_v50 = vadd.f32 %v1789_v40, %v716_v46 }
 0x106   : > { %v971_v57 = vmax.f32 %v725_v49, 0.0  ;;  %v1036_v63 = vsel %vm1032_vm2, %v970_v53, 0.0 }
 0x107   : > { %v969_v54 = vmax.f32 %v717_v50, 0.0  ;;  %v1033_v56 = vsel %vm1032_vm2, %v968_v48, 0.0 }
 0x108   : > { %v1038_v5 = vsel %vm1032_vm2, %v971_v57, 0.0 }
 0x109   : > { %v1034_v58 = vsel %vm1032_vm2, %v969_v54, 0.0  ;;  %v1494_v59 = vpop.f32.mrb[4].mxu0  ;;  %v1808_v4 = vpop.f32.mrb[4].mxu1 }
 0x10a   : > { %v1035_v60 = vadd.f32 %v1034_v58, %v1033_v56  ;;  %v738_v61 = vadd.f32 %v1494_v59, %v1789_v40  ;;  %v729_v62 = vpop.f32.mrb[5].mxu0  ;;  %v1813_v9 = vpop.f32.mrb[5].mxu1 }
 0x10b   : > { %v730_v0 = vadd.f32 %v1789_v40, %v729_v62  ;;  %v1495_v1 = vpop.f32.mrb[6].mxu0  ;;  %v1815_v12 = vpop.f32.mrb[6].mxu1 }
 0x10c   : > { %v1037_v2 = vadd.f32 %v1036_v63, %v1035_v60  ;;  %v732_v3 = vpop.f32.mrb[7].mxu0  ;;  %v741_v7 = vadd.f32 %v1495_v1, %v1789_v40  ;;  %v974_v10 = vmax.f32 %v738_v61, 0.0  ;;  %v1818_v15 = vpop.f32.mrb[7].mxu1 }
 0x10d   : > { %v972_v6 = vmax.f32 %v730_v0, 0.0  ;;  %v733_v8 = vadd.f32 %v1789_v40, %v732_v3 }
 0x10e   : > { %v1039_v11 = vadd.f32 %v1038_v5, %v1037_v2  ;;  %v975_v19 = vmax.f32 %v741_v7, 0.0  ;;  %v1044_v23 = vsel %vm1032_vm2, %v974_v10, 0.0 }
 0x10f   : > { %v1040_v13 = vsel %vm1032_vm2, %v972_v6, 0.0  ;;  %v973_v14 = vmax.f32 %v733_v8, 0.0 }
 0x110   : > { %v1041_v16 = vadd.f32 %v1040_v13, %v1039_v11  ;;  %v1046_v33 = vsel %vm1032_vm2, %v975_v19, 0.0 }
 0x111   : > { %v1042_v20 = vsel %vm1032_vm2, %v973_v14, 0.0  ;;  %v1498_v21 = vpop.f32.mrb[8].mxu0  ;;  %v1826_v31 = vpop.f32.mrb[8].mxu1 }
 0x112   : > { %v1043_v24 = vadd.f32 %v1042_v20, %v1041_v16  ;;  %v745_v25 = vpop.f32.mrb[9].mxu0  ;;  %v754_v26 = vadd.f32 %v1498_v21, %v1789_v40  ;;  %v1831_v37 = vpop.f32.mrb[9].mxu1 }
 0x113   : > { %v746_v27 = vadd.f32 %v1789_v40, %v745_v25  ;;  %v1499_v28 = vpop.f32.mrb[10].mxu0  ;;  %v1833_v39 = vpop.f32.mrb[10].mxu1 }
 0x114   : > { %v1045_v29 = vadd.f32 %v1044_v23, %v1043_v24  ;;  %v748_v30 = vpop.f32.mrb[11].mxu0  ;;  %v757_v35 = vadd.f32 %v1499_v28, %v1789_v40  ;;  %v978_v41 = vmax.f32 %v754_v26, 0.0  ;;  %v1836_v44 = vpop.f32.mrb[11].mxu1 }
 0x115   : > { %v976_v34 = vmax.f32 %v746_v27, 0.0  ;;  %v749_v36 = vadd.f32 %v1789_v40, %v748_v30 }
 0x116   : > { %v1047_v38 = vadd.f32 %v1046_v33, %v1045_v29  ;;  %v979_v46 = vmax.f32 %v757_v35, 0.0  ;;  %v1052_v54 = vsel %vm1032_vm2, %v978_v41, 0.0 }
 0x117   : > { %v1048_v42 = vsel %vm1032_vm2, %v976_v34, 0.0  ;;  %v977_v43 = vmax.f32 %v749_v36, 0.0 }
 0x118   : > { %v1049_v45 = vadd.f32 %v1048_v42, %v1047_v38  ;;  %v1054_v62 = vsel %vm1032_vm2, %v979_v46, 0.0 }
 0x119   : > { %v1050_v48 = vsel %vm1032_vm2, %v977_v43, 0.0  ;;  %v1502_v49 = vpop.f32.mrb[12].mxu0  ;;  %v1842_v61 = vpop.f32.mrb[12].mxu1 }
 0x11a   : > { %v1051_v50 = vadd.f32 %v1050_v48, %v1049_v45  ;;  %v761_v53 = vpop.f32.mrb[13].mxu0  ;;  %v770_v56 = vadd.f32 %v1502_v49, %v1789_v40  ;;  %v1847_v2 = vpop.f32.mrb[13].mxu1 }
 0x11b   : > { %v762_v57 = vadd.f32 %v1789_v40, %v761_v53  ;;  %v1503_v58 = vpop.f32.mrb[14].mxu0  ;;  %v1849_v5 = vpop.f32.mrb[14].mxu1 }
 0x11c   : > { %v1053_v59 = vadd.f32 %v1052_v54, %v1051_v50  ;;  %v764_v60 = vpop.f32.mrb[15].mxu0  ;;  %v773_v0 = vadd.f32 %v1503_v58, %v1789_v40  ;;  %v982_v6 = vmax.f32 %v770_v56, 0.0  ;;  %v1852_v10 = vpop.f32.mrb[15].mxu1 }
 0x11d   : > { %v980_v63 = vmax.f32 %v762_v57, 0.0  ;;  %v765_v1 = vadd.f32 %v1789_v40, %v764_v60 }
 0x11e   : > { %v1055_v3 = vadd.f32 %v1054_v62, %v1053_v59  ;;  %v983_v13 = vmax.f32 %v773_v0, 0.0  ;;  %v1060_v19 = vsel %vm1032_vm2, %v982_v6, 0.0 }
 0x11f   : > { %v1056_v7 = vsel %vm1032_vm2, %v980_v63, 0.0  ;;  %v981_v8 = vmax.f32 %v765_v1, 0.0 }
 0x120   : > { %v1057_v11 = vadd.f32 %v1056_v7, %v1055_v3  ;;  %v1062_v26 = vsel %vm1032_vm2, %v983_v13, 0.0 }
 0x121   : > { %v1058_v14 = vsel %vm1032_vm2, %v981_v8, 0.0  ;;  %v1506_v16 = vpop.f32.mrb[16].mxu0  ;;  %v1858_v25 = vpop.f32.mrb[16].mxu1 }
 0x122   : > { %v1059_v17 = vadd.f32 %v1058_v14, %v1057_v11  ;;  %v777_v18 = vpop.f32.mrb[17].mxu0  ;;  %v786_v20 = vadd.f32 %v1506_v16, %v1789_v40  ;;  %v1863_v30 = vpop.f32.mrb[17].mxu1 }
 0x123   : > { %v778_v21 = vadd.f32 %v1789_v40, %v777_v18  ;;  %v1507_v22 = vpop.f32.mrb[18].mxu0  ;;  %v1865_v33 = vpop.f32.mrb[18].mxu1 }
 0x124   : > { %v1061_v23 = vadd.f32 %v1060_v19, %v1059_v17  ;;  %v780_v24 = vpop.f32.mrb[19].mxu0  ;;  %v789_v28 = vadd.f32 %v1507_v22, %v1789_v40  ;;  %v986_v34 = vmax.f32 %v786_v20, 0.0  ;;  %v1868_v38 = vpop.f32.mrb[19].mxu1 }
 0x125   : > { %v984_v27 = vmax.f32 %v778_v21, 0.0  ;;  %v781_v29 = vadd.f32 %v1789_v40, %v780_v24 }
 0x126   : > { %v1063_v32 = vadd.f32 %v1062_v26, %v1061_v23  ;;  %v987_v42 = vmax.f32 %v789_v28, 0.0  ;;  %v1068_v49 = vsel %vm1032_vm2, %v986_v34, 0.0 }
 0x127   : > { %v1064_v35 = vsel %vm1032_vm2, %v984_v27, 0.0  ;;  %v985_v36 = vmax.f32 %v781_v29, 0.0 }
 0x128   : > { %v1065_v41 = vadd.f32 %v1064_v35, %v1063_v32  ;;  %v1070_v59 = vsel %vm1032_vm2, %v987_v42, 0.0 }
 0x129   : > { %v1066_v43 = vsel %vm1032_vm2, %v985_v36, 0.0  ;;  %v1510_v45 = vpop.f32.mrb[20].mxu0  ;;  %v1874_v58 = vpop.f32.mrb[20].mxu1 }
 0x12a   : > { %v1067_v46 = vadd.f32 %v1066_v43, %v1065_v41  ;;  %v793_v48 = vpop.f32.mrb[21].mxu0  ;;  %v802_v50 = vadd.f32 %v1510_v45, %v1789_v40  ;;  %v1879_v0 = vpop.f32.mrb[21].mxu1 }
 0x12b   : > { %v794_v53 = vadd.f32 %v1789_v40, %v793_v48  ;;  %v1511_v54 = vpop.f32.mrb[22].mxu0  ;;  %v1881_v3 = vpop.f32.mrb[22].mxu1 }
 0x12c   : > { %v1069_v56 = vadd.f32 %v1068_v49, %v1067_v46  ;;  %v796_v57 = vpop.f32.mrb[23].mxu0  ;;  %v805_v62 = vadd.f32 %v1511_v54, %v1789_v40  ;;  %v990_v6 = vmax.f32 %v802_v50, 0.0  ;;  %v1884_v11 = vpop.f32.mrb[23].mxu1 }
 0x12d   : > { %v988_v60 = vmax.f32 %v794_v53, 0.0  ;;  %v797_v63 = vadd.f32 %v1789_v40, %v796_v57 }
 0x12e   : > { %v1071_v1 = vadd.f32 %v1070_v59, %v1069_v56  ;;  %v991_v14 = vmax.f32 %v805_v62, 0.0  ;;  %v1076_v20 = vsel %vm1032_vm2, %v990_v6, 0.0 }
 0x12f   : > { %v1072_v7 = vsel %vm1032_vm2, %v988_v60, 0.0  ;;  %v989_v8 = vmax.f32 %v797_v63, 0.0 }
 0x130   : > { %v1073_v13 = vadd.f32 %v1072_v7, %v1071_v1  ;;  %v1078_v28 = vsel %vm1032_vm2, %v991_v14, 0.0 }
 0x131   : > { %v1074_v16 = vsel %vm1032_vm2, %v989_v8, 0.0  ;;  %v1514_v17 = vpop.f32.mrb[24].mxu0  ;;  %v1890_v27 = vpop.f32.mrb[24].mxu1 }
 0x132   : > { %v1075_v18 = vadd.f32 %v1074_v16, %v1073_v13  ;;  %v809_v19 = vpop.f32.mrb[25].mxu0  ;;  %v818_v21 = vadd.f32 %v1514_v17, %v1789_v40  ;;  %v1895_v35 = vpop.f32.mrb[25].mxu1 }
 0x133   : > { %v810_v22 = vadd.f32 %v1789_v40, %v809_v19  ;;  %v1515_v23 = vpop.f32.mrb[26].mxu0  ;;  %v1897_v41 = vpop.f32.mrb[26].mxu1 }
 0x134   : > { %v1077_v24 = vadd.f32 %v1076_v20, %v1075_v18  ;;  %v812_v26 = vpop.f32.mrb[27].mxu0  ;;  %v821_v32 = vadd.f32 %v1515_v23, %v1789_v40  ;;  %v994_v42 = vmax.f32 %v818_v21, 0.0  ;;  %v1900_v46 = vpop.f32.mrb[27].mxu1 }
 0x135   : > { %v992_v29 = vmax.f32 %v810_v22, 0.0  ;;  %v813_v34 = vadd.f32 %v1789_v40, %v812_v26 }
 0x136   : > { %v1079_v36 = vadd.f32 %v1078_v28, %v1077_v24  ;;  %v995_v49 = vmax.f32 %v821_v32, 0.0  ;;  %v1084_v57 = vsel %vm1032_vm2, %v994_v42, 0.0  ;;  %v858_v42 = vadd.f32 %v1789_v40, %v1797_v51 }
 0x137   : > { %v1080_v43 = vsel %vm1032_vm2, %v992_v29, 0.0  ;;  %v993_v45 = vmax.f32 %v813_v34, 0.0  ;;  %v861_v51 = vadd.f32 %v1789_v40, %v1801_v55 }
 0x138   : > { %v1081_v48 = vadd.f32 %v1080_v43, %v1079_v36  ;;  %v1086_v6 = vsel %vm1032_vm2, %v995_v49, 0.0 }
 0x139   : > { %v1082_v50 = vsel %vm1032_vm2, %v993_v45, 0.0  ;;  %v1518_v53 = vpop.f32.mrb[28].mxu0 }
 0x13a   : > { %v1083_v54 = vadd.f32 %v1082_v50, %v1081_v48  ;;  %v825_v56 = vpop.f32.mrb[29].mxu0  ;;  %v834_v59 = vadd.f32 %v1518_v53, %v1789_v40 }
 0x13b   : > { %v826_v60 = vadd.f32 %v1789_v40, %v825_v56  ;;  %v1519_v62 = vpop.f32.mrb[30].mxu0  ;;  %v1004_v56 = vmax.f32 %v858_v42, 0.0 }
 0x13c   : > { %v1085_v63 = vadd.f32 %v1084_v57, %v1083_v54  ;;  %v828_v1 = vpop.f32.mrb[31].mxu0  ;;  %v837_v8 = vadd.f32 %v1519_v62, %v1789_v40  ;;  %v998_v16 = vmax.f32 %v834_v59, 0.0 }
 0x13d   : > { %v996_v7 = vmax.f32 %v826_v60, 0.0  ;;  %v829_v13 = vadd.f32 %v1789_v40, %v828_v1  ;;  %v866_v1 = vadd.f32 %v1793_v47, %v1789_v40  ;;  %v877_v47 = vadd.f32 %v1789_v40, %v1818_v15 }
 0x13e   : > { %v1087_v14 = vadd.f32 %v1086_v6, %v1085_v63  ;;  %v999_v20 = vmax.f32 %v837_v8, 0.0  ;;  %v1092_v26 = vsel %vm1032_vm2, %v998_v16, 0.0  ;;  %v874_v16 = vadd.f32 %v1789_v40, %v1813_v9 }
 0x13f   : > { %v1088_v17 = vsel %vm1032_vm2, %v996_v7, 0.0  ;;  %v997_v18 = vmax.f32 %v829_v13, 0.0  ;;  %v869_v7 = vadd.f32 %v1799_v52, %v1789_v40  ;;  %v1109_v13 = vsel %vm1032_vm2, %v1004_v56, 0.0 }
 0x140   : > { %v1089_v19 = vadd.f32 %v1088_v17, %v1087_v14  ;;  %v1094_v43 = vsel %vm1032_vm2, %v999_v20, 0.0  ;;  %v1005_v14 = vmax.f32 %v861_v51, 0.0  ;;  %v1006_v55 = vmax.f32 %v866_v1, 0.0 }
 0x141   : > { %v1090_v21 = vsel %vm1032_vm2, %v997_v18, 0.0  ;;  %v1522_v22 = vpop.f32.mrb[32].mxu0 }
 0x142   : > { %v1091_v23 = vadd.f32 %v1090_v21, %v1089_v19  ;;  %v841_v24 = vpop.f32.mrb[33].mxu0  ;;  %v850_v28 = vadd.f32 %v1522_v22, %v1789_v40  ;;  %v1007_v19 = vmax.f32 %v869_v7, 0.0  ;;  %v1111_v20 = vsel %vm1032_vm2, %v1005_v14, 0.0 }
 0x143   : > { %v842_v29 = vadd.f32 %v1789_v40, %v841_v24  ;;  %v1523_v32 = vpop.f32.mrb[34].mxu0  ;;  %v1008_v21 = vmax.f32 %v874_v16, 0.0  ;;  %v1113_v52 = vsel %vm1032_vm2, %v1006_v55, 0.0  ;;  %v914_v7 = vadd.f32 %v1842_v61, %v1789_v40 }
 0x144   : > { %v1093_v34 = vadd.f32 %v1092_v26, %v1091_v23  ;;  %v844_v36 = vpop.f32.mrb[35].mxu0  ;;  %v853_v48 = vadd.f32 %v1523_v32, %v1789_v40  ;;  %v1002_v53 = vmax.f32 %v850_v28, 0.0  ;;  %v882_v23 = vadd.f32 %v1808_v4, %v1789_v40 }
 0x145   : > { %v1000_v45 = vmax.f32 %v842_v29, 0.0  ;;  %v845_v49 = vadd.f32 %v1789_v40, %v844_v36  ;;  %v1115_v24 = vsel %vm1032_vm2, %v1007_v19, 0.0  ;;  %v1117_v9 = vsel %vm1032_vm2, %v1008_v21, 0.0 }
 0x146   : > { %v1919_v50 = vadd.f32 %v1094_v43, %v1093_v34  ;;  %v1003_v59 = vmax.f32 %v853_v48, 0.0  ;;  %v1105_v63 = vsel %vm1032_vm2, %v1002_v53, 0.0  ;;  %v885_v28 = vadd.f32 %v1815_v12, %v1789_v40 }
 0x147   : > { %v1001_v54 = vmax.f32 %v845_v49, 0.0  ;;  %v1102_v57 = vsel %vm1032_vm2, %v1000_v45, 0.0  ;;  %v1009_v29 = vmax.f32 %v877_v47, 0.0  ;;  %v890_v32 = vadd.f32 %v1789_v40, %v1831_v37 }
 0x148   : > { %v1107_v8 = vsel %vm1032_vm2, %v1003_v59, 0.0  ;;  %v1010_v15 = vmax.f32 %v882_v23, 0.0  ;;  %v1011_v42 = vmax.f32 %v885_v28, 0.0  ;;  %v893_v4 = vadd.f32 %v1789_v40, %v1836_v44 }
 0x149   : > { %v1103_v60 = vsel %vm1032_vm2, %v1001_v54, 0.0  ;;  %v1119_v43 = vsel %vm1032_vm2, %v1009_v29, 0.0  ;;  %v1012_v45 = vmax.f32 %v890_v32, 0.0  ;;  %v898_v12 = vadd.f32 %v1826_v31, %v1789_v40 }
 0x14a   : > { %v1104_v62 = vadd.f32 %v1103_v60, %v1102_v57  ;;  %v1121_v49 = vsel %vm1032_vm2, %v1010_v15, 0.0  ;;  %v901_v37 = vadd.f32 %v1833_v39, %v1789_v40  ;;  %v1123_v54 = vsel %vm1032_vm2, %v1011_v42, 0.0 }
 0x14b   : > { %v1125_v56 = vsel %vm1032_vm2, %v1012_v45, 0.0  ;;  %v1013_v57 = vmax.f32 %v893_v4, 0.0  ;;  %v906_v59 = vadd.f32 %v1789_v40, %v1847_v2  ;;  %v1014_v44 = vmax.f32 %v898_v12, 0.0 }
 0x14c   : > { %v1106_v6 = vadd.f32 %v1105_v63, %v1104_v62  ;;  %v1015_v62 = vmax.f32 %v901_v37, 0.0  ;;  %v909_v31 = vadd.f32 %v1789_v40, %v1852_v10  ;;  %v917_v14 = vadd.f32 %v1849_v5, %v1789_v40 }
 0x14d   : > { %v1127_v63 = vsel %vm1032_vm2, %v1013_v57, 0.0  ;;  %v1016_v1 = vmax.f32 %v906_v59, 0.0  ;;  %v1129_v39 = vsel %vm1032_vm2, %v1014_v44, 0.0  ;;  %v1018_v10 = vmax.f32 %v914_v7, 0.0 }
 0x14e   : > { %v1108_v17 = vadd.f32 %v1107_v8, %v1106_v6  ;;  %v1131_v8 = vsel %vm1032_vm2, %v1015_v62, 0.0  ;;  %v1017_v16 = vmax.f32 %v909_v31, 0.0  ;;  %v1019_v19 = vmax.f32 %v917_v14, 0.0 }
 0x14f   : > { %v1133_v2 = vsel %vm1032_vm2, %v1016_v1, 0.0  ;;  %v925_v61 = vadd.f32 %v1789_v40, %v1868_v38  ;;  %v930_v5 = vadd.f32 %v1858_v25, %v1789_v40  ;;  %v941_v25 = vadd.f32 %v1789_v40, %v1884_v11 }
 0x150   : > { %v1110_v18 = vadd.f32 %v1109_v13, %v1108_v17  ;;  %v922_v17 = vadd.f32 %v1789_v40, %v1863_v30  ;;  %v933_v30 = vadd.f32 %v1865_v33, %v1789_v40  ;;  %v1139_v23 = vsel %vm1032_vm2, %v1019_v19, 0.0 }
 0x151   : > { %v1022_v38 = vmax.f32 %v930_v5, 0.0  ;;  %v946_v42 = vadd.f32 %v1874_v58, %v1789_v40  ;;  %v949_v4 = vadd.f32 %v1881_v3, %v1789_v40  ;;  %v957_v58 = vadd.f32 %v1789_v40, %v1900_v46 }
 0x152   : > { %v1112_v22 = vadd.f32 %v1111_v20, %v1110_v18  ;;  %v1135_v20 = vsel %vm1032_vm2, %v1017_v16, 0.0  ;;  %v1020_v21 = vmax.f32 %v922_v17, 0.0  ;;  %v1023_v32 = vmax.f32 %v933_v30, 0.0 }
 0x153   : > { %v1145_v33 = vsel %vm1032_vm2, %v1022_v38, 0.0  ;;  %v1026_v11 = vmax.f32 %v946_v42, 0.0  ;;  %v1027_v37 = vmax.f32 %v949_v4, 0.0  ;;  %v962_v3 = vadd.f32 %v1890_v27, %v1789_v40 }
 0x154   : > { %v1114_v26 = vadd.f32 %v1113_v52, %v1112_v22  ;;  %v1137_v22 = vsel %vm1032_vm2, %v1018_v10, 0.0  ;;  %v965_v62 = vadd.f32 %v1897_v41, %v1789_v40 }
 0x155   : > { %v1153_v59 = vsel %vm1032_vm2, %v1026_v11, 0.0  ;;  %v1030_v31 = vmax.f32 %v962_v3, 0.0 }
 0x156   : > { %v1116_v34 = vadd.f32 %v1115_v24, %v1114_v26  ;;  %v1141_v24 = vsel %vm1032_vm2, %v1020_v21, 0.0  ;;  %v1021_v26 = vmax.f32 %v925_v61, 0.0 }
 0x158   : > { %v1118_v36 = vadd.f32 %v1117_v9, %v1116_v34  ;;  %v938_v9 = vadd.f32 %v1789_v40, %v1879_v0  ;;  %v1143_v34 = vsel %vm1032_vm2, %v1021_v26, 0.0 }
 0x15a   : > { %v1120_v48 = vadd.f32 %v1119_v43, %v1118_v36  ;;  %v1024_v15 = vmax.f32 %v938_v9, 0.0  ;;  %v1147_v43 = vsel %vm1032_vm2, %v1023_v32, 0.0 }
 0x15c   : > { %v1122_v53 = vadd.f32 %v1121_v49, %v1120_v48  ;;  %v1149_v0 = vsel %vm1032_vm2, %v1024_v15, 0.0  ;;  %v1025_v48 = vmax.f32 %v941_v25, 0.0  ;;  %v954_v49 = vadd.f32 %v1789_v40, %v1895_v35 }
 0x15d   : > { %v1155_v35 = vsel %vm1032_vm2, %v1027_v37, 0.0 }
 0x15e   : > { %v1124_v60 = vadd.f32 %v1123_v54, %v1122_v53  ;;  %v1151_v54 = vsel %vm1032_vm2, %v1025_v48, 0.0 }
 0x160   : > { %v1126_v51 = vadd.f32 %v1125_v56, %v1124_v60  ;;  %v1028_v56 = vmax.f32 %v954_v49, 0.0  ;;  %v1096_v60 = vrot.slane %v1919_v50, 4 }
 0x162   : > { %v1128_v6 = vadd.f32 %v1127_v63, %v1126_v51  ;;  %v1157_v51 = vsel %vm1032_vm2, %v1028_v56, 0.0  ;;  %v1029_v63 = vmax.f32 %v957_v58, 0.0  ;;  %v1097_v46 = vadd.f32 %v1096_v60, %v1919_v50 }
 0x164   : > { %v1130_v13 = vadd.f32 %v1129_v39, %v1128_v6  ;;  %v1031_v39 = vmax.f32 %v965_v62, 0.0  ;;  %v1159_v7 = vsel %vm1032_vm2, %v1029_v63, 0.0 }
 0x166   : > { %v1132_v55 = vadd.f32 %v1131_v8, %v1130_v13  ;;  %v1161_v8 = vsel %vm1032_vm2, %v1030_v31, 0.0  ;;  %v1098_v13 = vrot.slane %v1097_v46, 2  ;;  %v1163_v14 = vsel %vm1032_vm2, %v1031_v39, 0.0 }
 0x168   : > { %v1134_v18 = vadd.f32 %v1133_v2, %v1132_v55  ;;  %v1099_v17 = vadd.f32 %v1098_v13, %v1097_v46 }
 0x16a   : > { %v1136_v47 = vadd.f32 %v1135_v20, %v1134_v18  ;;  %v1100_v55 = vrot.slane %v1099_v17, 1 }
 0x16c   : > { %v1138_v52 = vadd.f32 %v1137_v22, %v1136_v47  ;;  %v1101_v19 = vadd.f32 %v1100_v55, %v1099_v17  ;;  %v1436_v22 = vld [vmem:[%s320_s25] ss:$0 sm:$0xff] }
 0x16e   : > { %v1140_v28 = vadd.f32 %v1139_v23, %v1138_v52  ;;  %v1171_v21 = vmul.f32 0.00390625, %v1101_v19 }
 0x170   : > { %v1142_v29 = vadd.f32 %v1141_v24, %v1140_v28 }
 0x172   : > { %v1144_v36 = vadd.f32 %v1143_v34, %v1142_v29 }
 0x174   : > { %v1146_v45 = vadd.f32 %v1145_v33, %v1144_v36 }
 0x176   : > { %v1148_v12 = vadd.f32 %v1147_v43, %v1146_v45 }
 0x178   : > { %v1150_v53 = vadd.f32 %v1149_v0, %v1148_v12 }
 0x17a   : > { %v1152_v57 = vadd.f32 %v1151_v54, %v1150_v53 }
 0x17c   : > { %v1154_v44 = vadd.f32 %v1153_v59, %v1152_v57 }
 0x17e   : > { %v1156_v1 = vadd.f32 %v1155_v35, %v1154_v44 }
 0x180   : > { %v1158_v6 = vadd.f32 %v1157_v51, %v1156_v1 }
 0x182   : > { %v1160_v27 = vadd.f32 %v1159_v7, %v1158_v6 }
 0x184   : > { %v1162_v2 = vadd.f32 %v1161_v8, %v1160_v27 }
 0x186   : > { %v1164_v16 = vadd.f32 %v1163_v14, %v1162_v2 }
 0x188   : > { %v1165_v40 = vrot.slane %v1164_v16, 4 }
 0x18a   : > { %v1166_v41 = vadd.f32 %v1165_v40, %v1164_v16 }
 0x18c   : > { %v1167_v10 = vrot.slane %v1166_v41, 2 }
 0x18e   : > { %v1168_v50 = vadd.f32 %v1167_v10, %v1166_v41 }
 0x190   : > { %v1169_v18 = vrot.slane %v1168_v50, 1 }
 0x192   : > { %v1170_v20 = vadd.f32 %v1169_v18, %v1168_v50 }
 0x194   : > { %v1172_v61 = vmul.f32 0.00390625, %v1170_v20 }
 0x196   : > { %v1187_v47 = vsel %vm1186_vm4, %v1172_v61, %v1171_v21 }
 0x197   : > { %1561 = vmatmul.mubr.msk.f32.vlgmr.msra.gmra.mrb[28].mxu1 %vm1032_vm2, %v1187_v47 }
 0x26a   : > { %v1256_v5 = vpop.f32.mrb[28].mxu1 }
 0x26b   : > { %v1257_v52 = vadd.f32 %v1436_v22, %v1256_v5  ;;  %v1562_v30 = vpop.f32.mrb[29].mxu1 }
 0x26d   : > { %1261 = vst.msk [vmem:[%s325_s7] sm:$0x3] %vm1260_vm5, %v1257_v52 }
 0x26e PF: > { %s22_s26 = sadd.s32 1, %s1645_s26  }
 0x26f   : > { %p19_p13 = scmp.ge.s32.totalorder %s22_s26, 5  }
 0x271   :  { %21 = sbr.rel (!%p19_p13) target bundleno = 16 (0x10), region = 82 }

</bundles_post_ra>
